<compile_context>
chip_gen: v5e
topology: v5e:2x2
jax: 0.10.0
libtpu: 0.0.40
codegen_flags: <defaults>
</compile_context>

<pallas_src>
import functools

import jax
import jax.numpy as jnp
from jax import lax
from jax.experimental import pallas as pl
from jax.experimental.pallas import tpu as pltpu

_EPSILON = 0.1        # AntiSymmetricConv default epsilon
_GAMMA = 0.1          # AntiSymmetricConv default gamma
_LEAKY_SLOPE = 0.01   # F.leaky_relu default negative_slope
_NEG_LARGE = -1e30


def _round_up(v, m):
    return ((v + m - 1) // m) * m


# --------------------------------------------------------------------------- #
# Kernel: one AntiSymmetricConv layer + stage epilogue on a tile of node rows
# --------------------------------------------------------------------------- #
def _antisym_stage_kernel(adj_ref, x_ref, wcat_ref, b_ref, o_ref, *,
                          tile_m, num_features, apply_softmax):
    # adj_ref : (tm, Np)    row tile of normalized dense adjacency
    # x_ref   : (Np, Fp)    full (padded) node features, resident across grid
    # wcat_ref: (2*Fp, Fp)  fused [W_anti^T ; (Wlin @ Wgcn)^T] (pre-transposed)
    # b_ref   : (1, Fp)     bias (f32)
    # o_ref   : (tm, Fp)    output row tile
    i = pl.program_id(0)
    row0 = pl.multiple_of(i * tile_m, tile_m)
    x_tile = x_ref[pl.ds(row0, tile_m), :]

    cdt = wcat_ref.dtype

    # Graph aggregation on the MXU: (tm, Np) @ (Np, Fp) -> f32 accumulate.
    agg = jnp.dot(adj_ref[...], x_ref[...], preferred_element_type=jnp.float32)

    # Fused linear part of the conv as a single matmul.
    lhs = jnp.concatenate([x_tile.astype(cdt), agg.astype(cdt)], axis=-1)
    z = jnp.dot(lhs, wcat_ref[...], preferred_element_type=jnp.float32)
    z = z + b_ref[...].astype(jnp.float32)

    # Epilogue in f32 on VPU/EUP.
    xf = x_tile.astype(jnp.float32)
    conv_out = xf + _EPSILON * jnp.tanh(z)           # x + eps * tanh(h)

    if not apply_softmax:
        # Stage 1:  out = x + leaky_relu(conv1(x))
        act = jnp.where(conv_out >= 0, conv_out, _LEAKY_SLOPE * conv_out)
        out = xf + act
    else:
        # Stage 2:  out = softmax(conv2(x), axis=-1), masking padded lanes.
        logits = conv_out
        if num_features != logits.shape[-1]:
            col = lax.broadcasted_iota(jnp.int32, logits.shape, 1)
            logits = jnp.where(col < num_features, logits, _NEG_LARGE)
        m = jnp.max(logits, axis=-1, keepdims=True)
        e = jnp.exp(logits - m)
        out = e / jnp.sum(e, axis=-1, keepdims=True)

    o_ref[...] = out.astype(o_ref.dtype)


# --------------------------------------------------------------------------- #
# Wrapper-side weight preparation (do once, outside the hot path)
# --------------------------------------------------------------------------- #
def _pad2(a, shape):
    out = jnp.zeros(shape, a.dtype)
    return out.at[: a.shape[0], : a.shape[1]].set(a)


def prepare_antisymmetric_params(params, num_features, f_pad,
                                 compute_dtype=jnp.float32):
    eye = jnp.eye(num_features, dtype=jnp.float32)

    def prep(p):
        w_anti = p["w"] - p["w"].T - _GAMMA * eye           # (F, F)
        w_comb = p["w_lin"] @ p["w_gcn"]                    # lin(gcn(.)) fused
        w_anti_t = _pad2(w_anti.T, (f_pad, f_pad))
        w_comb_t = _pad2(w_comb.T, (f_pad, f_pad))
        wcat = jnp.concatenate([w_anti_t, w_comb_t], axis=0)    # (2*Fp, Fp)
        bias = jnp.zeros((1, f_pad), jnp.float32).at[0, :num_features].set(
            p["bias"].astype(jnp.float32))
        return wcat.astype(compute_dtype), bias

    return prep(params["conv1"]), prep(params["conv2"])


# --------------------------------------------------------------------------- #
# Forward
# --------------------------------------------------------------------------- #
def antisymmetric_forward(x, adj, params, *, tile_m=None,
                          compute_dtype=jnp.float32):
    """x: (N, F) node features.  adj: (N, N) GCN-normalized dense adjacency."""
    n, f = x.shape
    f_pad = _round_up(f, 128)                          # lane-dense output
    if tile_m is None:
        tile_m = 256
    tile_m = _round_up(min(tile_m, n), 8)
    n_pad = _round_up(n, tile_m)                       # no divisibility assert
    grid = (n_pad // tile_m,)

    (wcat1, b1), (wcat2, b2) = prepare_antisymmetric_params(
        params, f, f_pad, compute_dtype=compute_dtype)

    x_p = jnp.zeros((n_pad, f_pad), compute_dtype).at[:n, :f].set(
        x.astype(compute_dtype))
    adj_p = jnp.zeros((n_pad, n_pad), compute_dtype).at[:n, :n].set(
        adj.astype(compute_dtype))

    def stage_call(x_in, wcat, b, apply_softmax):
        kern = functools.partial(
            _antisym_stage_kernel, tile_m=tile_m, num_features=f,
            apply_softmax=apply_softmax)
        out_dtype = jnp.float32 if apply_softmax else compute_dtype
        return pl.pallas_call(
            kern,
            out_shape=jax.ShapeDtypeStruct((n_pad, f_pad), out_dtype),
            grid_spec=pltpu.PrefetchScalarGridSpec(
                num_scalar_prefetch=0,
                grid=grid,
                in_specs=[
                    pl.BlockSpec((tile_m, n_pad), lambda i: (i, 0)),    # adj rows
                    pl.BlockSpec((n_pad, f_pad), lambda i: (0, 0)),     # full x
                    pl.BlockSpec((2 * f_pad, f_pad), lambda i: (0, 0)), # fused W
                    pl.BlockSpec((1, f_pad), lambda i: (0, 0)),         # bias
                ],
                out_specs=pl.BlockSpec((tile_m, f_pad), lambda i: (i, 0)),
            ),
            compiler_params=pltpu.CompilerParams(
                dimension_semantics=("parallel",)),
        )(adj_p, x_in, wcat, b)

    # Stage 1:  x + leaky_relu(conv1(x))
    x_mid = stage_call(x_p, wcat1, b1, apply_softmax=False)
    # Stage 2:  softmax(conv2(x + leaky_relu(conv1(x))), -1)
    out = stage_call(x_mid, wcat2, b2, apply_softmax=True)
    return out[:n, :f].astype(x.dtype)


# --------------------------------------------------------------------------- #
# Graph / params helpers and pure-JAX reference
# --------------------------------------------------------------------------- #
def build_gcn_adjacency(edge_index, num_nodes):
    """Dense D^-1/2 (A + I) D^-1/2 as used by GCNConv (add_self_loops=True)."""
    src, dst = edge_index
    a = jnp.zeros((num_nodes, num_nodes), jnp.float32)
    a = a.at[dst, src].add(1.0)                       # messages flow src -> dst
    a = a + jnp.eye(num_nodes, dtype=jnp.float32)
    deg = jnp.sum(a, axis=1)
    d_inv_sqrt = jnp.where(deg > 0, lax.rsqrt(deg), 0.0)
    return a * d_inv_sqrt[:, None] * d_inv_sqrt[None, :]


def init_antisymmetric_params(key, num_features, dtype=jnp.float32):
    def conv(k):
        ks = jax.random.split(k, 4)
        s = 1.0 / jnp.sqrt(num_features)
        return {
            "w": jax.random.uniform(ks[0], (num_features, num_features), dtype, -s, s),
            "w_gcn": jax.random.uniform(ks[1], (num_features, num_features), dtype, -s, s),
            "w_lin": jax.random.uniform(ks[2], (num_features, num_features), dtype, -s, s),
            "bias": jax.random.uniform(ks[3], (num_features,), dtype, -s, s),
        }
    k1, k2 = jax.random.split(key)
    return {"conv1": conv(k1), "conv2": conv(k2)}


def _conv_ref(x, adj, p):
    f = x.shape[-1]
    hi = lax.Precision.HIGHEST
    w_anti = p["w"] - p["w"].T - _GAMMA * jnp.eye(f, dtype=x.dtype)
    h_phi = jnp.dot(jnp.dot(adj, x, precision=hi), p["w_gcn"].T, precision=hi)
    h = (jnp.dot(x, w_anti.T, precision=hi)
         + jnp.dot(h_phi, p["w_lin"].T, precision=hi) + p["bias"])
    return x + _EPSILON * jnp.tanh(h)


def antisymmetric_reference(x, adj, params):
    x1 = _conv_ref(x, adj, params["conv1"])
    x1 = jnp.where(x1 >= 0, x1, _LEAKY_SLOPE * x1)
    x2 = _conv_ref(x + x1, adj, params["conv2"])
    return jax.nn.softmax(x2, axis=-1)


# --------------------------------------------------------------------------- #
if __name__ == "__main__":
    key = jax.random.PRNGKey(0)
    k_x, k_p = jax.random.split(key)

    num_nodes, num_features = 200, 32
    x = jax.random.normal(k_x, (num_nodes, num_features), dtype=jnp.float32)

    # Deterministic undirected ring graph stored with both edge directions.
    idx = jnp.arange(num_nodes, dtype=jnp.int32)
    src = jnp.concatenate([idx, (idx + 1) % num_nodes])
    dst = jnp.concatenate([(idx + 1) % num_nodes, idx])
    edge_index = jnp.stack([src, dst], axis=0)

    adj = build_gcn_adjacency(edge_index, num_nodes)
    params = init_antisymmetric_params(k_p, num_features)

    y = antisymmetric_forward(x, adj, params, tile_m=128)   # grid of 2 row tiles
    y = jax.block_until_ready(y)

    y_ref = antisymmetric_reference(x, adj, params)
    assert y.shape == (num_nodes, num_features)
    assert jnp.allclose(y, y_ref, atol=1e-3, rtol=1e-3), (
        "mismatch vs reference, max abs err = "
        f"{float(jnp.max(jnp.abs(y - y_ref)))}")

    print("KERNEL_OK")
</pallas_src>

<mosaic_0001>
module attributes {stable_mosaic.version = 11 : i64} {
  func.func @_antisym_stage_kernel(%arg0: i32, %arg1: memref<128x256xf32, #tpu.memory_space<vmem>>, %arg2: memref<256x128xf32, #tpu.memory_space<vmem>>, %arg3: memref<256x128xf32, #tpu.memory_space<vmem>>, %arg4: memref<1x128xf32, #tpu.memory_space<vmem>>, %arg5: memref<128x128xf32, #tpu.memory_space<vmem>>) attributes {dimension_semantics = [#tpu.dimension_semantics<parallel>], iteration_bounds = array<i64: 2>, scalar_prefetch = 0 : i64, scratch_operands = 0 : i64, tpu.core_type = #tpu.core_type<tc>, window_params = [{transform_indices = @transform_0, window_bounds = array<i64: 128, 256>}, {pipeline_mode = #tpu.pipeline_mode<synchronous>, transform_indices = @transform_1, window_bounds = array<i64: 256, 128>}, {pipeline_mode = #tpu.pipeline_mode<synchronous>, transform_indices = @transform_2, window_bounds = array<i64: 256, 128>}, {pipeline_mode = #tpu.pipeline_mode<synchronous>, transform_indices = @transform_3, window_bounds = array<i64: 1, 128>}, {transform_indices = @transform_4, window_bounds = array<i64: 128, 128>}]} {
    %c128_i32 = arith.constant 128 : i32
    %0 = arith.muli %arg0, %c128_i32 : i32
    %1 = tpu.assume_multiple %0, 128 : i32
    %2 = arith.index_cast %1 : i32 to index
    %c0 = arith.constant 0 : index
    %3 = vector.load %arg2[%2, %c0] : memref<256x128xf32, #tpu.memory_space<vmem>>, vector<128x128xf32>
    %c0_0 = arith.constant 0 : index
    %c0_1 = arith.constant 0 : index
    %4 = vector.load %arg1[%c0_0, %c0_1] : memref<128x256xf32, #tpu.memory_space<vmem>>, vector<128x256xf32>
    %c0_2 = arith.constant 0 : index
    %c0_3 = arith.constant 0 : index
    %5 = vector.load %arg2[%c0_2, %c0_3] : memref<256x128xf32, #tpu.memory_space<vmem>>, vector<256x128xf32>
    %cst = arith.constant dense<0.000000e+00> : vector<128x128xf32>
    %6 = tpu.matmul %4, %5, %cst {dimension_numbers = #tpu.dot_dimension_numbers<[1], [0], [0], [1], [0, 0, 1, 1], [], []>} : vector<128x256xf32>, vector<256x128xf32>, vector<128x128xf32> -> vector<128x128xf32>
    %7 = tpu.concatenate %3, %6 in 1 : vector<128x128xf32>, vector<128x128xf32> -> vector<128x256xf32>
    %c0_4 = arith.constant 0 : index
    %c0_5 = arith.constant 0 : index
    %8 = vector.load %arg3[%c0_4, %c0_5] : memref<256x128xf32, #tpu.memory_space<vmem>>, vector<256x128xf32>
    %cst_6 = arith.constant dense<0.000000e+00> : vector<128x128xf32>
    %9 = tpu.matmul %7, %8, %cst_6 {dimension_numbers = #tpu.dot_dimension_numbers<[1], [0], [0], [1], [0, 0, 1, 1], [], []>} : vector<128x256xf32>, vector<256x128xf32>, vector<128x128xf32> -> vector<128x128xf32>
    %c0_7 = arith.constant 0 : index
    %c0_8 = arith.constant 0 : index
    %10 = vector.load %arg4[%c0_7, %c0_8] : memref<1x128xf32, #tpu.memory_space<vmem>>, vector<1x128xf32>
    %11 = vector.broadcast %10 : vector<1x128xf32> to vector<128x128xf32>
    %12 = arith.addf %9, %11 : vector<128x128xf32>
    %13 = math.tanh %12 : vector<128x128xf32>
    %cst_9 = arith.constant 1.000000e-01 : f32
    %14 = vector.broadcast %cst_9 : f32 to vector<128x128xf32>
    %15 = arith.mulf %14, %13 : vector<128x128xf32>
    %16 = arith.addf %3, %15 : vector<128x128xf32>
    %cst_10 = arith.constant 0.000000e+00 : f32
    %17 = vector.broadcast %cst_10 : f32 to vector<128x128xf32>
    %18 = arith.cmpf oge, %16, %17 : vector<128x128xf32>
    %cst_11 = arith.constant 0.00999999977 : f32
    %19 = vector.broadcast %cst_11 : f32 to vector<128x128xf32>
    %20 = arith.mulf %19, %16 : vector<128x128xf32>
    %21 = arith.select %18, %16, %20 : vector<128x128xi1>, vector<128x128xf32>
    %22 = arith.addf %3, %21 : vector<128x128xf32>
    %c0_12 = arith.constant 0 : index
    %c0_13 = arith.constant 0 : index
    %23 = vector.load %arg5[%c0_12, %c0_13] : memref<128x128xf32, #tpu.memory_space<vmem>>, vector<128x128xf32>
    tpu.vector_store %arg5[%c0_12, %c0_13], %22 {strides = array<i32>} : memref<128x128xf32, #tpu.memory_space<vmem>>, vector<128x128xf32>,
    return
  }
  func.func @transform_0(%arg0: i32) -> (i32, i32) {
    %c0_i32 = arith.constant 0 : i32
    %c0_i32_0 = arith.constant 0 : i32
    return %arg0, %c0_i32 : i32, i32
  }
  func.func @transform_1(%arg0: i32) -> (i32, i32) {
    %c0_i32 = arith.constant 0 : i32
    %c0_i32_0 = arith.constant 0 : i32
    %c0_i32_1 = arith.constant 0 : i32
    return %c0_i32, %c0_i32_0 : i32, i32
  }
  func.func @transform_2(%arg0: i32) -> (i32, i32) {
    %c0_i32 = arith.constant 0 : i32
    %c0_i32_0 = arith.constant 0 : i32
    %c0_i32_1 = arith.constant 0 : i32
    return %c0_i32, %c0_i32_0 : i32, i32
  }
  func.func @transform_3(%arg0: i32) -> (i32, i32) {
    %c0_i32 = arith.constant 0 : i32
    %c0_i32_0 = arith.constant 0 : i32
    %c0_i32_1 = arith.constant 0 : i32
    return %c0_i32, %c0_i32_0 : i32, i32
  }
  func.func @transform_4(%arg0: i32) -> (i32, i32) {
    %c0_i32 = arith.constant 0 : i32
    %c0_i32_0 = arith.constant 0 : i32
    return %arg0, %c0_i32 : i32, i32
  }
}

</mosaic_0001>

<bundles_post_ra>
// kernel: tpu_custom_call.1
= control target key start
LH: loop header
LB: loop body
LE: loop exit
PB: predicated region body
PF: predicated region fallthrough
CT: control target
= control target key end

     0   :  { %9 = vsyncpa [#allocation3], 0  ;;  %s1512_s0 = inlined_call_operand.hbm [shape: f32[256,256], index: 0, kind: input, shape index: {}]   ;;  %s1513_s1 = inlined_call_operand.hbm [shape: f32[256,128], index: 1, kind: input, shape index: {}]   ;;  %s1514_s2 = inlined_call_operand.hbm [shape: f32[256,128], index: 2, kind: input, shape index: {}]   ;;  %s1515_s3 = inlined_call_operand.vmem [shape: f32[1,128], index: 3, kind: input, shape index: {}]   ;;  %s1516_s4 = inlined_call_operand.hbm [shape: f32[256,128], index: 4, kind: output, shape index: {}]  }
   0x1   :  { %11 = vsyncpa [#allocation3 + $0x1], 0 }
   0x2   :  { %12 = vsyncpa [#allocation6], 0 }
   0x3   :  { %13 = vsyncpa [#allocation4], 0 }
   0x4   :  { %15 = vsyncpa [#allocation4 + $0x1], 0  ;;  %s1194_s15 = smov 0   ;;  %s1196_s16 = smov 0  }
   0x5   :  { %s1198_s17 = smov 0   ;;  %s1200_s18 = smov 0  }
   0x6 LB: > { %s1215_s19 = sadd.s32 4294967295, %s1159_s18   ;;  %s870_s20 = sadd.s32 4294967294, %s1159_s18   ;;  %s1159_s18 = sphi %s1200_s18, %s1526_s18   ;;  %s1155_s17 = sphi %s1198_s17, %s1525_s17   ;;  %s1151_s16 = sphi %s1196_s16, %s1524_s16   ;;  %s1147_s15 = sphi %s1194_s15, %s1523_s15  }
   0x7   : > { %p41_p0 = scmp.ne.s32.totalorder %s1151_s16, %s1147_s15  ;;  %p42_p1 = scmp.eq.s32.totalorder %s1215_s19, 0 }
   0x8   : > { %p128_p2 = scmp.eq.s32.totalorder %s1215_s19, 1  ;;  %p134_p3 = scmp.eq.s32.totalorder %s870_s20, 1 }
   0x9   : > { %p1224_p4 = por %p42_p1, %p41_p0  ;;  %p871_p5 = scmp.ge.s32.totalorder %s1159_s18, 1 }
   0xa   : > { %p1229_p6 = por %p134_p3, %p41_p0  ;;  %p141_p7 = scmp.lt.s32.totalorder %s1159_s18, 3 }
   0xb   : > { %s152_s25 = sshll.u32 %s1513_s1, 4  ;;  %s1161_s27 = smov [#allocation5]   ;;  %s153_s25 = int_to_ptr.hbm [resolvable:$true] %s152_s25 }
   0xc   : > { %p1237_p8 = pnand %p871_p5, %p141_p7  ;;  %s154_s28 = sshll.u32 %s1161_s27, 4  ;;  %s155_s28 = int_to_ptr.vmem [resolvable:$true] %s154_s28 }
   0xd   : > { %s166_s5 = sshll.u32 %s1514_s2, 4  ;;  %s1162_s6 = smov 128   ;;  %s167_s5 = int_to_ptr.hbm [resolvable:$true] %s166_s5 }
   0xe   : > { %p905_p9 = pneg %p1237_p8  ;;  %s1163_s7 = smov 8  }
   0xf   : > { %s1164_s8 = smov [#allocation7]   ;;  %s1250_s10 = sadd.s32 1, %s1159_s18  }
  0x10   : > { %p906_p10 = pnand %p905_p9, %p42_p1  ;;  %s168_s9 = sshll.u32 %s1164_s8, 4  ;;  %s169_s9 = int_to_ptr.vmem [resolvable:$true] %s168_s9 }
  0x11   : > { %s28_s11 = sadd.s32 1, %s1155_s17  ;;  %s25_s12 = ssub.s32 %s1159_s18, %s1250_s10 }
  0x12   : > { %908 = dma.hbm_to_vmem [thread:$0]  (!%p906_p10), %s153_s25, 4096, %s155_s28, [#allocation6], %s1162_s6, %s1162_s6, %s1163_s7  }
  0x13   : > { %911 = dma.hbm_to_vmem [thread:$0]  (!%p906_p10), %s167_s5, 4096, %s169_s9, [#allocation6], %s1162_s6, %s1162_s6, %s1163_s7  }
  0x14   : > { %p35_p12 = scmp.ne.s32.totalorder %s1155_s17, %s1151_s16  ;;  %p26_p13 = scmp.eq.s32.totalorder %s25_s12, 0 }
  0x15   : > { %p36_p0 = scmp.eq.s32.totalorder %s1159_s18, 0  ;;  %p922_p5 = scmp.lt.s32.totalorder %s1159_s18, 2 }
  0x16   : > { %p1260_p3 = por %p128_p2, %p35_p12  ;;  %s185_s20 = sand.u32 1, %s1155_s17  }
  0x17   : > { %s1266_s14 = scalar_select %p26_p13, %s1155_s17, %s28_s11  }
  0x18   : > { %p37_p7 = por %p36_p0, %p35_p12  ;;  %s875_s23 = sshll.u32 %s185_s20, 8 }
  0x19   : > { %s891_s24 = sshll.u32 %s1159_s18, 8  ;;  %s189_s29 = scalar_lea.vmem [#allocation2], %s875_s23 }
  0x1a   : > { %s195_s28 = scalar_lea.hbm %s1512_s0, %s891_s24  ;;  %s198_s30 = sshll.u32 %s189_s29, 4  ;;  %s199_s30 = int_to_ptr.vmem [resolvable:$true] %s198_s30 }
  0x1b   : > { %s196_s5 = sshll.u32 %s195_s28, 4  ;;  %p1273_p2 = pnand %p922_p5, %p37_p7  ;;  %s197_s5 = int_to_ptr.hbm [resolvable:$true] %s196_s5 }
  0x1c   : > { %s186_s7 = scalar_lea.sflag [#allocation3], %s185_s20  ;;  %s1059_s8 = sshra.s32 %s197_s5, 4  ;;  %s1060_s8 = int_to_ptr.hbm [resolvable:$true] %s1059_s8 }
  0x1d   : > { %s1061_s9 = scalar_lea.hbm %s1060_s8, 256  ;;  %p1063_p10 = pneg %p1273_p2 }
  0x1e   : > { %p1062_p9 = scmp.ne.s32.totalorder %s1060_s8, %s1061_s9  ;;  %s1066_s23 = scalar_lea.hbm %s1512_s0, 512 }
  0x1f   : > { %p1067_p0 = scmp.lt.s32.totalorder %s1060_s8, %s1512_s0  ;;  %p1068_p5 = scmp.lt.s32.totalorder %s1066_s23, %s1061_s9 }
  0x20   : > { %p1064_p12 = pnand %p1063_p10, %p1062_p9 }
  0x21   : > { %p1069_p7 = por %p1068_p5, %p1067_p0 }
  0x22   : > { %p1065_p13 = pneg %p1064_p12 }
  0x24   : > { %p1070_p11 = pnand %p1069_p7, %p1065_p13 }
  0x26   : > { %1073 = shalt.err (!%p1070_p11)
}
  0x27   : > { %s1165_s20 = smov 256   ;;  %s1166_s27 = smov 16  }
  0x28   : > { %915 = dma.hbm_to_vmem [thread:$0]  (!%p1273_p2), %s197_s5, 4096, %s199_s30, %s186_s7, %s1165_s20, %s1165_s20, %s1166_s27  }
  0x29   : > { %210 = sbr.rel (%p1237_p8) target bundleno = 484 (0x1e4), region = 36  ;;  %s1290_s28 = sand.u32 (!%p1237_p8), 1, %s1151_s16  }
  0x2a   : > { %s880_s29 = sshll.u32 (!%p1237_p8), %s1290_s28, 8  ;;  %s213_s8 = scalar_lea.sflag (!%p1237_p8), [#allocation3], %s1290_s28 }
  0x2b   : > { %s1294_s9 = scalar_lea.vmem (!%p1237_p8), [#allocation2], %s880_s29 }
  0x2e   : > { %1134 = dma.done.wait (%p1224_p4), %s213_s8, 4096  }
  0x2f   : > { %1136 = vsyncadd (%p1224_p4), %s213_s8, 4294963200 }
  0x30   : > { %1138 = dma.done.wait (%p42_p1), [#allocation6], 8192  }
  0x31   : > { %1140 = vsyncadd (%p42_p1), [#allocation6], 4294959104  ;;  %v319_v0 = vld [vmem:[#allocation5 + $0x78] sm:$0xff]  ;;  %v318_v2 = vld [vmem:[#allocation5 + $0x70] sm:$0xff]  ;;  %s884_s21 = sshll.u32 %s1215_s19, 7  ;;  %s883_s6 = sshll.u32 %s1290_s28, 7 }
  0x32   : > { %v335_v1 = vld [vmem:[#allocation5 + $0xf8] sm:$0xff]  ;;  %336 = vmatpush.msra.mxu0 %v319_v0  ;;  %v334_v3 = vld [vmem:[#allocation5 + $0xf0] sm:$0xff]  ;;  %v317_v4 = vld [vmem:[#allocation5 + $0x68] sm:$0xff]  ;;  %s1333_s26 = scalar_lea.vmem [#allocation5], %s884_s21  ;;  %s1416_s7 = scalar_lea.vmem [#allocation8], %s883_s6 }
  0x33   : > { %401 = vmatpush.msra.mxu1 %v335_v1  ;;  %v333_v5 = vld [vmem:[#allocation5 + $0xe8] sm:$0xff]  ;;  %v316_v6 = vld [vmem:[#allocation5 + $0x60] sm:$0xff]  ;;  %v315_v8 = vld [vmem:[#allocation5 + $0x58] sm:$0xff]  ;;  %s772_s23 = scalar_lea.hbm %s1516_s4, %s884_s21  ;;  %s773_s25 = sshll.u32 %s1416_s7, 4  ;;  %s774_s25 = int_to_ptr.vmem [resolvable:$true] %s773_s25 }
  0x34   : > { %337 = vmatpush.msra.mxu0 %v318_v2  ;;  %v332_v7 = vld [vmem:[#allocation5 + $0xe0] sm:$0xff]  ;;  %v331_v9 = vld [vmem:[#allocation5 + $0xd8] sm:$0xff]  ;;  %v314_v10 = vld [vmem:[#allocation5 + $0x50] sm:$0xff]  ;;  %s775_s24 = sshll.u32 %s772_s23, 4  ;;  %s761_s19 = scalar_lea.sflag [#allocation4], %s1290_s28  ;;  %s776_s24 = int_to_ptr.hbm [resolvable:$true] %s775_s24 }
  0x35   : > { %402 = vmatpush.msra.mxu1 %v334_v3  ;;  %v330_v11 = vld [vmem:[#allocation5 + $0xd0] sm:$0xff]  ;;  %v313_v12 = vld [vmem:[#allocation5 + $0x48] sm:$0xff]  ;;  %v312_v14 = vld [vmem:[#allocation5 + $0x40] sm:$0xff]  ;;  %s1103_s20 = sshra.s32 %s776_s24, 4  ;;  %s1104_s20 = int_to_ptr.hbm [resolvable:$true] %s1103_s20 }
  0x36   : > { %338 = vmatpush.msra.mxu0 %v317_v4  ;;  %v329_v13 = vld [vmem:[#allocation5 + $0xc8] sm:$0xff]  ;;  %v328_v15 = vld [vmem:[#allocation5 + $0xc0] sm:$0xff]  ;;  %v311_v16 = vld [vmem:[#allocation5 + $0x38] sm:$0xff]  ;;  %s1105_s27 = scalar_lea.hbm %s1104_s20, 128  ;;  %p1110_p11 = scmp.lt.s32.totalorder %s1104_s20, %s1516_s4 }
  0x37   : > { %403 = vmatpush.msra.mxu1 %v333_v5  ;;  %v327_v17 = vld [vmem:[#allocation5 + $0xb8] sm:$0xff]  ;;  %v310_v18 = vld [vmem:[#allocation5 + $0x30] sm:$0xff]  ;;  %v309_v20 = vld [vmem:[#allocation5 + $0x28] sm:$0xff]  ;;  %p1106_p1 = scmp.ne.s32.totalorder %s1104_s20, %s1105_s27 }
  0x38   : > { %339 = vmatpush.msra.mxu0 %v316_v6  ;;  %v326_v19 = vld [vmem:[#allocation5 + $0xb0] sm:$0xff]  ;;  %v325_v21 = vld [vmem:[#allocation5 + $0xa8] sm:$0xff]  ;;  %v308_v22 = vld [vmem:[#allocation5 + $0x20] sm:$0xff] }
  0x39   : > { %404 = vmatpush.msra.mxu1 %v332_v7  ;;  %v324_v23 = vld [vmem:[#allocation5 + $0xa0] sm:$0xff]  ;;  %v307_v24 = vld [vmem:[#allocation5 + $0x18] sm:$0xff]  ;;  %v306_v26 = vld [vmem:[#allocation5 + $0x10] sm:$0xff]  ;;  %p1107_p4 = pnand %p1106_p1, %p1260_p3 }
  0x3a   : > { %340 = vmatpush.msra.mxu0 %v315_v8  ;;  %v323_v25 = vld [vmem:[#allocation5 + $0x98] sm:$0xff]  ;;  %v322_v27 = vld [vmem:[#allocation5 + $0x90] sm:$0xff]  ;;  %v305_v28 = vld [vmem:[#allocation5 + $0x8] sm:$0xff] }
  0x3b   : > { %405 = vmatpush.msra.mxu1 %v331_v9  ;;  %v321_v29 = vld [vmem:[#allocation5 + $0x88] sm:$0xff]  ;;  %v304_v30 = vld [vmem:[#allocation5] sm:$0xff]  ;;  %v274_v34 = vld [vmem:[%s1294_s9 + $0x10] sm:$0xff]  ;;  %p1108_p8 = pneg %p1107_p4 }
  0x3c   : > { %341 = vmatpush.msra.mxu0 %v314_v10  ;;  %v320_v31 = vld [vmem:[#allocation5 + $0x80] sm:$0xff]  ;;  %v273_v33 = vld [vmem:[%s1294_s9 + $0x8] sm:$0xff]  ;;  %v275_v35 = vld [vmem:[%s1294_s9 + $0x18] sm:$0xff] }
  0x3d   : > { %406 = vmatpush.msra.mxu1 %v330_v11  ;;  %v272_v32 = vld [vmem:[%s1294_s9] sm:$0xff]  ;;  %v277_v37 = vld [vmem:[%s1294_s9 + $0x28] sm:$0xff]  ;;  %v278_v38 = vld [vmem:[%s1294_s9 + $0x30] sm:$0xff] }
  0x3e   : > { %342 = vmatpush.msra.mxu0 %v313_v12  ;;  %v276_v36 = vld [vmem:[%s1294_s9 + $0x20] sm:$0xff]  ;;  %v279_v39 = vld [vmem:[%s1294_s9 + $0x38] sm:$0xff]  ;;  %v281_v41 = vld [vmem:[%s1294_s9 + $0x48] sm:$0xff] }
  0x3f   : > { %407 = vmatpush.msra.mxu1 %v329_v13  ;;  %v280_v40 = vld [vmem:[%s1294_s9 + $0x40] sm:$0xff]  ;;  %v282_v42 = vld [vmem:[%s1294_s9 + $0x50] sm:$0xff]  ;;  %v283_v43 = vld [vmem:[%s1294_s9 + $0x58] sm:$0xff] }
  0x40   : > { %343 = vmatpush.msra.mxu0 %v312_v14  ;;  %v284_v44 = vld [vmem:[%s1294_s9 + $0x60] sm:$0xff]  ;;  %v285_v45 = vld [vmem:[%s1294_s9 + $0x68] sm:$0xff]  ;;  %v286_v46 = vld [vmem:[%s1294_s9 + $0x70] sm:$0xff] }
  0x41   : > { %408 = vmatpush.msra.mxu1 %v328_v15  ;;  %v287_v47 = vld [vmem:[%s1294_s9 + $0x78] sm:$0xff]  ;;  %v288_v49 = vld [vmem:[%s1294_s9 + $0x80] sm:$0xff]  ;;  %v289_v50 = vld [vmem:[%s1294_s9 + $0x88] sm:$0xff] }
  0x42   : > { %344 = vmatpush.msra.mxu0 %v311_v16  ;;  %v481_v48 = vld [vmem:[#allocation7 + $0x78] sm:$0xff]  ;;  %v480_v51 = vld [vmem:[#allocation7 + $0x70] sm:$0xff]  ;;  %v479_v53 = vld [vmem:[#allocation7 + $0x68] sm:$0xff] }
  0x43   : > { %409 = vmatpush.msra.mxu1 %v327_v17  ;;  %502 = vmatpush.msra.mxu2 %v481_v48  ;;  %v497_v52 = vld [vmem:[#allocation7 + $0xf8] sm:$0xff]  ;;  %v496_v54 = vld [vmem:[#allocation7 + $0xf0] sm:$0xff]  ;;  %v478_v55 = vld [vmem:[#allocation7 + $0x60] sm:$0xff] }
  0x44   : > { %345 = vmatpush.msra.mxu0 %v310_v18  ;;  %567 = vmatpush.msra.mxu3 %v497_v52  ;;  %v495_v56 = vld [vmem:[#allocation7 + $0xe8] sm:$0xff]  ;;  %v477_v57 = vld [vmem:[#allocation7 + $0x58] sm:$0xff]  ;;  %v494_v58 = vld [vmem:[#allocation7 + $0xe0] sm:$0xff] }
  0x45   : > { %410 = vmatpush.msra.mxu1 %v326_v19  ;;  %503 = vmatpush.msra.mxu2 %v480_v51  ;;  %v290_v59 = vld [vmem:[%s1294_s9 + $0x90] sm:$0xff]  ;;  %v291_v60 = vld [vmem:[%s1294_s9 + $0x98] sm:$0xff]  ;;  %v475_v63 = vld [vmem:[#allocation7 + $0x48] sm:$0xff] }
  0x46   : > { %346 = vmatpush.msra.mxu0 %v309_v20  ;;  %568 = vmatpush.msra.mxu3 %v496_v54  ;;  %v476_v61 = vld [vmem:[#allocation7 + $0x50] sm:$0xff]  ;;  %v493_v62 = vld [vmem:[#allocation7 + $0xd8] sm:$0xff]  ;;  %v474_v1 = vld [vmem:[#allocation7 + $0x40] sm:$0xff] }
  0x47   : > { %411 = vmatpush.msra.mxu1 %v325_v21  ;;  %504 = vmatpush.msra.mxu2 %v479_v53  ;;  %v492_v0 = vld [vmem:[#allocation7 + $0xd0] sm:$0xff]  ;;  %v491_v2 = vld [vmem:[#allocation7 + $0xc8] sm:$0xff]  ;;  %v473_v3 = vld [vmem:[#allocation7 + $0x38] sm:$0xff] }
  0x48   : > { %347 = vmatpush.msra.mxu0 %v308_v22  ;;  %569 = vmatpush.msra.mxu3 %v495_v56  ;;  %v490_v4 = vld [vmem:[#allocation7 + $0xc0] sm:$0xff]  ;;  %v293_v6 = vld [vmem:[%s1294_s9 + $0xa8] sm:$0xff]  ;;  %v472_v7 = vld [vmem:[#allocation7 + $0x30] sm:$0xff] }
  0x49   : > { %412 = vmatpush.msra.mxu1 %v324_v23  ;;  %505 = vmatpush.msra.mxu2 %v478_v55  ;;  %v292_v5 = vld [vmem:[%s1294_s9 + $0xa0] sm:$0xff]  ;;  %v489_v8 = vld [vmem:[#allocation7 + $0xb8] sm:$0xff]  ;;  %v471_v9 = vld [vmem:[#allocation7 + $0x28] sm:$0xff] }
  0x4a   : > { %348 = vmatpush.msra.mxu0 %v307_v24  ;;  %570 = vmatpush.msra.mxu3 %v494_v58  ;;  %v488_v10 = vld [vmem:[#allocation7 + $0xb0] sm:$0xff]  ;;  %v470_v11 = vld [vmem:[#allocation7 + $0x20] sm:$0xff]  ;;  %v487_v12 = vld [vmem:[#allocation7 + $0xa8] sm:$0xff] }
  0x4b   : > { %413 = vmatpush.msra.mxu1 %v323_v25  ;;  %506 = vmatpush.msra.mxu2 %v477_v57  ;;  %v469_v13 = vld [vmem:[#allocation7 + $0x18] sm:$0xff]  ;;  %v486_v14 = vld [vmem:[#allocation7 + $0xa0] sm:$0xff]  ;;  %v294_v15 = vld [vmem:[%s1294_s9 + $0xb0] sm:$0xff] }
  0x4c   : > { %349 = vmatpush.msra.mxu0 %v306_v26  ;;  %571 = vmatpush.msra.mxu3 %v493_v62  ;;  %v295_v16 = vld [vmem:[%s1294_s9 + $0xb8] sm:$0xff]  ;;  %v468_v17 = vld [vmem:[#allocation7 + $0x10] sm:$0xff]  ;;  %v467_v19 = vld [vmem:[#allocation7 + $0x8] sm:$0xff] }
  0x4d   : > { %414 = vmatpush.msra.mxu1 %v322_v27  ;;  %507 = vmatpush.msra.mxu2 %v476_v61  ;;  %v485_v18 = vld [vmem:[#allocation7 + $0x98] sm:$0xff]  ;;  %v484_v20 = vld [vmem:[#allocation7 + $0x90] sm:$0xff]  ;;  %v466_v21 = vld [vmem:[#allocation7] sm:$0xff] }
  0x4e   : > { %350 = vmatpush.msra.mxu0 %v305_v28  ;;  %572 = vmatpush.msra.mxu3 %v492_v0  ;;  %v483_v22 = vld [vmem:[#allocation7 + $0x88] sm:$0xff]  ;;  %v296_v23 = vld [vmem:[%s1294_s9 + $0xc0] sm:$0xff]  ;;  %v298_v27 = vld [vmem:[%s1294_s9 + $0xd0] sm:$0xff] }
  0x4f   : > { %415 = vmatpush.msra.mxu1 %v321_v29  ;;  %508 = vmatpush.msra.mxu2 %v475_v63  ;;  %v297_v24 = vld [vmem:[%s1294_s9 + $0xc8] sm:$0xff]  ;;  %v1336_v25 = vld [vmem:[%s1333_s26] sm:$0xff]  ;;  %v299_v28 = vld [vmem:[%s1294_s9 + $0xd8] sm:$0xff] }
  0x50   : > { %351 = vmatpush.msra.mxu0 %v304_v30  ;;  %573 = vmatpush.msra.mxu3 %v491_v2  ;;  %v482_v26 = vld [vmem:[#allocation7 + $0x80] sm:$0xff]  ;;  %v1342_v29 = vld [vmem:[%s1333_s26 + $0x8] sm:$0xff]  ;;  %v1382_v62 = vld [vmem:[%s1333_s26 + $0x50] sm:$0xff] }
  0x51   : > { %416 = vmatpush.msra.mxu1 %v320_v31  ;;  %352 = vmatmul.f32.vlgmr.msra.gmra.mxu0 %v272_v32  ;;  %v300_v30 = vld [vmem:[%s1294_s9 + $0xe0] sm:$0xff]  ;;  %v301_v31 = vld [vmem:[%s1294_s9 + $0xe8] sm:$0xff]  ;;  %v1348_v32 = vld [vmem:[%s1333_s26 + $0x10] sm:$0xff] }
  0x52   : > { %417 = vmatmul.f32.vlgmr.msra.gmra.mxu1 %v273_v33  ;;  %509 = vmatpush.msra.mxu2 %v474_v1  ;;  %v302_v33 = vld [vmem:[%s1294_s9 + $0xf0] sm:$0xff]  ;;  %v1374_v54 = vld [vmem:[%s1333_s26 + $0x40] sm:$0xff]  ;;  %v1378_v58 = vld [vmem:[%s1333_s26 + $0x48] sm:$0xff] }
  0x53   : > { %574 = vmatpush.msra.mxu3 %v490_v4  ;;  %v1386_v2 = vld [vmem:[%s1333_s26 + $0x58] sm:$0xff] }
  0x54   : > { %510 = vmatpush.msra.mxu2 %v473_v3 }
  0x55   : > { %575 = vmatpush.msra.mxu3 %v489_v8 }
  0x56   : > { %511 = vmatpush.msra.mxu2 %v472_v7 }
  0x57   : > { %576 = vmatpush.msra.mxu3 %v488_v10  ;;  %v1394_v10 = vld [vmem:[%s1333_s26 + $0x68] sm:$0xff] }
  0x58   : > { %512 = vmatpush.msra.mxu2 %v471_v9 }
  0x59   : > { %355 = vmatmul.f32.gmra.mxu0 %v274_v34  ;;  %577 = vmatpush.msra.mxu3 %v487_v12  ;;  %v303_v34 = vld [vmem:[%s1294_s9 + $0xf8] sm:$0xff]  ;;  %s1109_s9 = scalar_lea.hbm %s1516_s4, 256 }
  0x5a   : > { %420 = vmatmul.f32.gmra.mxu1 %v275_v35  ;;  %513 = vmatpush.msra.mxu2 %v470_v11  ;;  %v1354_v35 = vld [vmem:[%s1333_s26 + $0x18] sm:$0xff]  ;;  %p1111_p2 = scmp.lt.s32.totalorder %s1109_s9, %s1105_s27 }
  0x5b   : > { %578 = vmatpush.msra.mxu3 %v486_v14  ;;  %v1398_v14 = vld [vmem:[%s1333_s26 + $0x70] sm:$0xff] }
  0x5c   : > { %514 = vmatpush.msra.mxu2 %v469_v13  ;;  %p1112_p9 = por %p1111_p2, %p1110_p11 }
  0x5d   : > { %579 = vmatpush.msra.mxu3 %v485_v18  ;;  %v1402_v18 = vld [vmem:[%s1333_s26 + $0x78] sm:$0xff] }
  0x5e   : > { %515 = vmatpush.msra.mxu2 %v468_v17  ;;  %p1113_p10 = pnand %p1112_p9, %p1108_p8 }
  0x5f   : > { %580 = vmatpush.msra.mxu3 %v484_v20 }
  0x60   : > { %516 = vmatpush.msra.mxu2 %v467_v19 }
  0x61   : > { %358 = vmatmul.f32.gmra.mxu0 %v276_v36  ;;  %581 = vmatpush.msra.mxu3 %v483_v22 }
  0x62   : > { %423 = vmatmul.f32.gmra.mxu1 %v277_v37  ;;  %517 = vmatpush.msra.mxu2 %v466_v21 }
  0x63   : > { %518 = vmatmul.f32.vlgmr.msra.gmra.mxu2 %v1336_v25  ;;  %582 = vmatpush.msra.mxu3 %v482_v26 }
  0x69   : > { %361 = vmatmul.f32.gmra.mxu0 %v278_v38  ;;  %v1358_v38 = vld [vmem:[%s1333_s26 + $0x20] sm:$0xff] }
  0x6a   : > { %426 = vmatmul.f32.gmra.mxu1 %v279_v39 }
  0x6b   : > { %521 = vmatmul.f32.gmra.mxu2 %v1342_v29 }
  0x71   : > { %364 = vmatmul.f32.gmra.mxu0 %v280_v40 }
  0x72   : > { %429 = vmatmul.f32.gmra.mxu1 %v281_v41 }
  0x73   : > { %524 = vmatmul.f32.gmra.mxu2 %v1348_v32 }
  0x79   : > { %367 = vmatmul.f32.gmra.mxu0 %v282_v42  ;;  %v1362_v42 = vld [vmem:[%s1333_s26 + $0x28] sm:$0xff] }
  0x7a   : > { %432 = vmatmul.f32.gmra.mxu1 %v283_v43 }
  0x7b   : > { %527 = vmatmul.f32.gmra.mxu2 %v1354_v35 }
  0x81   : > { %370 = vmatmul.f32.gmra.mxu0 %v284_v44 }
  0x82   : > { %435 = vmatmul.f32.gmra.mxu1 %v285_v45 }
  0x83   : > { %530 = vmatmul.f32.gmra.mxu2 %v1358_v38 }
  0x89   : > { %373 = vmatmul.f32.gmra.mxu0 %v286_v46  ;;  %v1366_v46 = vld [vmem:[%s1333_s26 + $0x30] sm:$0xff] }
  0x8a   : > { %438 = vmatmul.f32.gmra.mxu1 %v287_v47 }
  0x8b   : > { %533 = vmatmul.f32.gmra.mxu2 %v1362_v42 }
  0x91   : > { %376 = vmatmul.f32.gmra.mxu0 %v288_v49 }
  0x92   : > { %441 = vmatmul.f32.gmra.mxu1 %v289_v50  ;;  %v1370_v50 = vld [vmem:[%s1333_s26 + $0x38] sm:$0xff] }
  0x93   : > { %536 = vmatmul.f32.gmra.mxu2 %v1366_v46 }
  0x99   : > { %379 = vmatmul.f32.gmra.mxu0 %v290_v59 }
  0x9a   : > { %444 = vmatmul.f32.gmra.mxu1 %v291_v60 }
  0x9b   : > { %539 = vmatmul.f32.gmra.mxu2 %v1370_v50 }
  0xa1   : > { %382 = vmatmul.f32.gmra.mxu0 %v292_v5 }
  0xa2   : > { %447 = vmatmul.f32.gmra.mxu1 %v293_v6  ;;  %v1390_v6 = vld [vmem:[%s1333_s26 + $0x60] sm:$0xff] }
  0xa3   : > { %542 = vmatmul.f32.gmra.mxu2 %v1374_v54 }
  0xa9   : > { %385 = vmatmul.f32.gmra.mxu0 %v294_v15 }
  0xaa   : > { %450 = vmatmul.f32.gmra.mxu1 %v295_v16 }
  0xab   : > { %545 = vmatmul.f32.gmra.mxu2 %v1378_v58 }
  0xb1   : > { %388 = vmatmul.f32.gmra.mxu0 %v296_v23 }
  0xb2   : > { %453 = vmatmul.f32.gmra.mxu1 %v297_v24 }
  0xb3   : > { %548 = vmatmul.f32.gmra.mxu2 %v1382_v62 }
  0xb9   : > { %391 = vmatmul.f32.gmra.mxu0 %v298_v27 }
  0xba   : > { %456 = vmatmul.f32.gmra.mxu1 %v299_v28 }
  0xbb   : > { %551 = vmatmul.f32.gmra.mxu2 %v1386_v2 }
  0xc1   : > { %394 = vmatmul.f32.gmra.mxu0 %v300_v30 }
  0xc2   : > { %459 = vmatmul.f32.gmra.mxu1 %v301_v31 }
  0xc3   : > { %554 = vmatmul.f32.gmra.mxu2 %v1390_v6 }
  0xc9   : > { %397 = vmatmul.f32.gmra.mxu0 %v302_v33 }
  0xca   : > { %462 = vmatmul.f32.gmra.mxu1 %v303_v34 }
  0xcb   : > { %557 = vmatmul.f32.gmra.mxu2 %v1394_v10 }
  0xce   : > { %v353_v36 = vpop.f32.mrf.mxu0 }
  0xcf   : > { %v418_v37 = vpop.f32.mrf.mxu1 }
  0xd0   : > { %v419_v39 = vadd.f32 %v418_v37, %v353_v36 }
  0xd2   : > { %583 = vmatmul.f32.vlgmr.msra.gmra.mxu3 %v419_v39 }
  0xd3   : > { %560 = vmatmul.f32.gmra.mxu2 %v1398_v14 }
  0xd6   : > { %v356_v40 = vpop.f32.mrf.mxu0 }
  0xd7   : > { %v421_v41 = vpop.f32.mrf.mxu1 }
  0xd8   : > { %v422_v43 = vadd.f32 %v421_v41, %v356_v40  ;;  %v1408_v40 = vld [vmem:[%s1515_s3] ss:$0 sm:$0xff] }
  0xda   : > { %586 = vmatmul.f32.gmra.mxu3 %v422_v43 }
  0xdb   : > { %563 = vmatmul.f32.gmra.mxu2 %v1402_v18 }
  0xde   : > { %v359_v44 = vpop.f32.mrf.mxu0 }
  0xdf   : > { %v424_v45 = vpop.f32.mrf.mxu1 }
  0xe0   : > { %v425_v47 = vadd.f32 %v424_v45, %v359_v44 }
  0xe2   : > { %589 = vmatmul.f32.gmra.mxu3 %v425_v47 }
  0xe6   : > { %v362_v48 = vpop.f32.mrf.mxu0  ;;  %v519_v23 = vpop.f32.mrf.mxu2 }
  0xe7   : > { %v427_v49 = vpop.f32.mrf.mxu1  ;;  %v520_v43 = vadd.f32 %v1408_v40, %v519_v23 }
  0xe8   : > { %v428_v51 = vadd.f32 %v427_v49, %v362_v48 }
  0xea   : > { %592 = vmatmul.f32.gmra.mxu3 %v428_v51 }
  0xee   : > { %v365_v52 = vpop.f32.mrf.mxu0  ;;  %v522_v28 = vpop.f32.mrf.mxu2 }
  0xef   : > { %v430_v53 = vpop.f32.mrf.mxu1  ;;  %v523_v48 = vadd.f32 %v1408_v40, %v522_v28 }
  0xf0   : > { %v431_v55 = vadd.f32 %v430_v53, %v365_v52 }
  0xf2   : > { %595 = vmatmul.f32.gmra.mxu3 %v431_v55 }
  0xf6   : > { %v368_v56 = vpop.f32.mrf.mxu0  ;;  %v525_v34 = vpop.f32.mrf.mxu2 }
  0xf7   : > { %v433_v57 = vpop.f32.mrf.mxu1 }
  0xf8   : > { %v434_v59 = vadd.f32 %v433_v57, %v368_v56  ;;  %v526_v56 = vadd.f32 %v1408_v40, %v525_v34 }
  0xfa   : > { %598 = vmatmul.f32.gmra.mxu3 %v434_v59 }
  0xfe   : > { %v371_v60 = vpop.f32.mrf.mxu0  ;;  %v528_v41 = vpop.f32.mrf.mxu2 }
  0xff   : > { %v436_v61 = vpop.f32.mrf.mxu1 }
 0x100   : > { %v437_v63 = vadd.f32 %v436_v61, %v371_v60 }
 0x102   : > { %601 = vmatmul.f32.gmra.mxu3 %v437_v63 }
 0x106   : > { %v374_v0 = vpop.f32.mrf.mxu0  ;;  %v531_v47 = vpop.f32.mrf.mxu2 }
 0x107   : > { %v439_v1 = vpop.f32.mrf.mxu1 }
 0x108   : > { %v440_v3 = vadd.f32 %v439_v1, %v374_v0 }
 0x10a   : > { %604 = vmatmul.f32.gmra.mxu3 %v440_v3 }
 0x10e   : > { %v377_v4 = vpop.f32.mrf.mxu0  ;;  %v534_v59 = vpop.f32.mrf.mxu2 }
 0x10f   : > { %v442_v5 = vpop.f32.mrf.mxu1  ;;  %v535_v28 = vadd.f32 %v1408_v40, %v534_v59 }
 0x110   : > { %v443_v7 = vadd.f32 %v442_v5, %v377_v4  ;;  %v529_v5 = vadd.f32 %v1408_v40, %v528_v41 }
 0x112   : > { %607 = vmatmul.f32.gmra.mxu3 %v443_v7 }
 0x116   : > { %v380_v8 = vpop.f32.mrf.mxu0 }
 0x117   : > { %v445_v9 = vpop.f32.mrf.mxu1 }
 0x118   : > { %v446_v11 = vadd.f32 %v445_v9, %v380_v8 }
 0x11a   : > { %610 = vmatmul.f32.gmra.mxu3 %v446_v11  ;;  %v537_v11 = vpop.f32.mrf.mxu2 }
 0x11e   : > { %v383_v12 = vpop.f32.mrf.mxu0 }
 0x11f   : > { %v448_v13 = vpop.f32.mrf.mxu1 }
 0x120   : > { %v449_v15 = vadd.f32 %v448_v13, %v383_v12 }
 0x122   : > { %613 = vmatmul.f32.gmra.mxu3 %v449_v15 }
 0x126   : > { %v386_v16 = vpop.f32.mrf.mxu0 }
 0x127   : > { %v451_v17 = vpop.f32.mrf.mxu1 }
 0x128   : > { %v452_v19 = vadd.f32 %v451_v17, %v386_v16  ;;  %v532_v17 = vadd.f32 %v1408_v40, %v531_v47 }
 0x12a   : > { %616 = vmatmul.f32.gmra.mxu3 %v452_v19 }
 0x12e   : > { %v389_v20 = vpop.f32.mrf.mxu0 }
 0x12f   : > { %v454_v21 = vpop.f32.mrf.mxu1 }
 0x130   : > { %v455_v22 = vadd.f32 %v454_v21, %v389_v20 }
 0x132   : > { %619 = vmatmul.f32.gmra.mxu3 %v455_v22 }
 0x136   : > { %v392_v24 = vpop.f32.mrf.mxu0 }
 0x137   : > { %v457_v26 = vpop.f32.mrf.mxu1 }
 0x138   : > { %v458_v27 = vadd.f32 %v457_v26, %v392_v24 }
 0x13a   : > { %622 = vmatmul.f32.gmra.mxu3 %v458_v27 }
 0x13e   : > { %v395_v30 = vpop.f32.mrf.mxu0 }
 0x13f   : > { %v460_v31 = vpop.f32.mrf.mxu1 }
 0x140   : > { %v461_v33 = vadd.f32 %v460_v31, %v395_v30 }
 0x142   : > { %625 = vmatmul.f32.gmra.mxu3 %v461_v33 }
 0x146   : > { %v398_v36 = vpop.f32.mrf.mxu0 }
 0x147   : > { %v463_v37 = vpop.f32.mrf.mxu1 }
 0x148   : > { %v464_v39 = vadd.f32 %v463_v37, %v398_v36 }
 0x14a   : > { %628 = vmatmul.f32.gmra.mxu3 %v464_v39 }
 0x155   : > { %v584_v44 = vpop.f32.mrf.mxu3 }
 0x156   : > { %v585_v45 = vadd.f32 %v584_v44, %v520_v43  ;;  %v538_v43 = vadd.f32 %v1408_v40, %v537_v11 }
 0x158   : > { %967 = vtanh.f32 %v585_v45 }
 0x15d   : > { %v587_v49 = vpop.f32.mrf.mxu3 }
 0x15e   : > { %v968_v51 = vpop.eup %967  ;;  %v588_v52 = vadd.f32 %v587_v49, %v523_v48 }
 0x15f   : > { %v648_v53 = vmul.f32 0.1, %v968_v51 }
 0x160   : > { %969 = vtanh.f32 %v588_v52 }
 0x161   : > { %v664_v55 = vadd.f32 %v648_v53, %v1336_v25 }
 0x163   : > { %vm680_vm0 = vcmp.ge.f32.partialorder %v664_v55, 0.0  ;;  %v696_v57 = vmul.f32 0.01, %v664_v55 }
 0x165   : > { %v712_v60 = vsel %vm680_vm0, %v664_v55, %v696_v57  ;;  %v590_v61 = vpop.f32.mrf.mxu3 }
 0x166   : > { %v970_v63 = vpop.eup %969  ;;  %v728_v0 = vadd.f32 %v712_v60, %v1336_v25  ;;  %v591_v1 = vadd.f32 %v590_v61, %v526_v56 }
 0x167   : > { %v649_v3 = vmul.f32 0.1, %v970_v63 }
 0x168   : > { %744 = vst [vmem:[%s1416_s7] sm:$0xff] %v728_v0  ;;  %971 = vtanh.f32 %v591_v1 }
 0x169   : > { %v665_v4 = vadd.f32 %v649_v3, %v1342_v29 }
 0x16b   : > { %vm681_vm1 = vcmp.ge.f32.partialorder %v665_v4, 0.0  ;;  %v697_v7 = vmul.f32 0.01, %v665_v4 }
 0x16d   : > { %v713_v8 = vsel %vm681_vm1, %v665_v4, %v697_v7  ;;  %v593_v9 = vpop.f32.mrf.mxu3 }
 0x16e   : > { %v972_v12 = vpop.eup %971  ;;  %v729_v25 = vadd.f32 %v713_v8, %v1342_v29  ;;  %v594_v13 = vadd.f32 %v593_v9, %v529_v5  ;;  %v540_v29 = vpop.f32.mrf.mxu2 }
 0x16f   : > { %v650_v15 = vmul.f32 0.1, %v972_v12  ;;  %v541_v53 = vadd.f32 %v1408_v40, %v540_v29 }
 0x170   : > { %745 = vst [vmem:[%s1416_s7 + $0x8] sm:$0xff] %v729_v25  ;;  %973 = vtanh.f32 %v594_v13 }
 0x171   : > { %v666_v16 = vadd.f32 %v650_v15, %v1348_v32 }
 0x173   : > { %vm682_vm2 = vcmp.ge.f32.partialorder %v666_v16, 0.0  ;;  %v698_v19 = vmul.f32 0.01, %v666_v16 }
 0x175   : > { %v714_v20 = vsel %vm682_vm2, %v666_v16, %v698_v19  ;;  %v596_v21 = vpop.f32.mrf.mxu3 }
 0x176   : > { %v974_v22 = vpop.eup %973  ;;  %v730_v23 = vadd.f32 %v714_v20, %v1348_v32  ;;  %v597_v24 = vadd.f32 %v596_v21, %v532_v17  ;;  %v543_v41 = vpop.f32.mrf.mxu2 }
 0x177   : > { %v651_v26 = vmul.f32 0.1, %v974_v22  ;;  %v544_v1 = vadd.f32 %v1408_v40, %v543_v41 }
 0x178   : > { %746 = vst [vmem:[%s1416_s7 + $0x10] sm:$0xff] %v730_v23  ;;  %975 = vtanh.f32 %v597_v24 }
 0x179   : > { %v667_v27 = vadd.f32 %v651_v26, %v1354_v35 }
 0x17b   : > { %vm683_vm3 = vcmp.ge.f32.partialorder %v667_v27, 0.0  ;;  %v699_v30 = vmul.f32 0.01, %v667_v27 }
 0x17d   : > { %v715_v31 = vsel %vm683_vm3, %v667_v27, %v699_v30  ;;  %v599_v33 = vpop.f32.mrf.mxu3 }
 0x17e   : > { %v976_v34 = vpop.eup %975  ;;  %v731_v36 = vadd.f32 %v715_v31, %v1354_v35  ;;  %v600_v37 = vadd.f32 %v599_v33, %v535_v28  ;;  %v546_v56 = vpop.f32.mrf.mxu2 }
 0x17f   : > { %v652_v32 = vmul.f32 0.1, %v976_v34  ;;  %v547_v25 = vadd.f32 %v1408_v40, %v546_v56 }
 0x180   : > { %747 = vst [vmem:[%s1416_s7 + $0x18] sm:$0xff] %v731_v36  ;;  %977 = vtanh.f32 %v600_v37 }
 0x181   : > { %v668_v39 = vadd.f32 %v652_v32, %v1358_v38 }
 0x183   : > { %vm684_vm4 = vcmp.ge.f32.partialorder %v668_v39, 0.0  ;;  %v700_v44 = vmul.f32 0.01, %v668_v39 }
 0x185   : > { %v716_v45 = vsel %vm684_vm4, %v668_v39, %v700_v44  ;;  %v602_v47 = vpop.f32.mrf.mxu3 }
 0x186   : > { %v978_v48 = vpop.eup %977  ;;  %v732_v49 = vadd.f32 %v716_v45, %v1358_v38  ;;  %v603_v51 = vadd.f32 %v602_v47, %v538_v43  ;;  %v549_v7 = vpop.f32.mrf.mxu2 }
 0x187   : > { %v653_v35 = vmul.f32 0.1, %v978_v48  ;;  %v550_v23 = vadd.f32 %v1408_v40, %v549_v7 }
 0x188   : > { %748 = vst [vmem:[%s1416_s7 + $0x20] sm:$0xff] %v732_v49  ;;  %979 = vtanh.f32 %v603_v51 }
 0x189   : > { %v669_v52 = vadd.f32 %v653_v35, %v1362_v42 }
 0x18b   : > { %vm685_vm5 = vcmp.ge.f32.partialorder %v669_v52, 0.0  ;;  %v701_v55 = vmul.f32 0.01, %v669_v52 }
 0x18d   : > { %v717_v57 = vsel %vm685_vm5, %v669_v52, %v701_v55  ;;  %v605_v59 = vpop.f32.mrf.mxu3 }
 0x18e   : > { %v980_v60 = vpop.eup %979  ;;  %v733_v61 = vadd.f32 %v717_v57, %v1362_v42  ;;  %v606_v63 = vadd.f32 %v605_v59, %v541_v53 }
 0x18f   : > { %v654_v38 = vmul.f32 0.1, %v980_v60 }
 0x190   : > { %749 = vst [vmem:[%s1416_s7 + $0x28] sm:$0xff] %v733_v61  ;;  %981 = vtanh.f32 %v606_v63 }
 0x191   : > { %v670_v0 = vadd.f32 %v654_v38, %v1366_v46 }
 0x193   : > { %vm686_vm6 = vcmp.ge.f32.partialorder %v670_v0, 0.0  ;;  %v702_v3 = vmul.f32 0.01, %v670_v0 }
 0x195   : > { %v718_v4 = vsel %vm686_vm6, %v670_v0, %v702_v3  ;;  %v608_v5 = vpop.f32.mrf.mxu3 }
 0x196   : > { %v982_v8 = vpop.eup %981  ;;  %v734_v9 = vadd.f32 %v718_v4, %v1366_v46  ;;  %v609_v11 = vadd.f32 %v608_v5, %v544_v1  ;;  %v552_v46 = vpop.f32.mrf.mxu2 }
 0x197   : > { %v655_v42 = vmul.f32 0.1, %v982_v8  ;;  %v553_v34 = vadd.f32 %v1408_v40, %v552_v46 }
 0x198   : > { %750 = vst [vmem:[%s1416_s7 + $0x30] sm:$0xff] %v734_v9  ;;  %983 = vtanh.f32 %v609_v11 }
 0x199   : > { %v671_v12 = vadd.f32 %v655_v42, %v1370_v50 }
 0x19b   : > { %vm687_vm7 = vcmp.ge.f32.partialorder %v671_v12, 0.0  ;;  %v703_v13 = vmul.f32 0.01, %v671_v12 }
 0x19d   : > { %v719_v15 = vsel %vm687_vm7, %v671_v12, %v703_v13  ;;  %v611_v16 = vpop.f32.mrf.mxu3 }
 0x19e   : > { %v984_v17 = vpop.eup %983  ;;  %v735_v19 = vadd.f32 %v719_v15, %v1370_v50  ;;  %v612_v20 = vadd.f32 %v611_v16, %v547_v25  ;;  %v555_v33 = vpop.f32.mrf.mxu2 }
 0x19f   : > { %v656_v21 = vmul.f32 0.1, %v984_v17  ;;  %v556_v45 = vadd.f32 %v1408_v40, %v555_v33 }
 0x1a0   : > { %751 = vst [vmem:[%s1416_s7 + $0x38] sm:$0xff] %v735_v19  ;;  %985 = vtanh.f32 %v612_v20 }
 0x1a1   : > { %v672_v22 = vadd.f32 %v656_v21, %v1374_v54 }
 0x1a3   : > { %vm688_vm8 = vcmp.ge.f32.partialorder %v672_v22, 0.0  ;;  %v704_v24 = vmul.f32 0.01, %v672_v22 }
 0x1a5   : > { %v720_v26 = vsel %vm688_vm8, %v672_v22, %v704_v24  ;;  %v614_v29 = vpop.f32.mrf.mxu3 }
 0x1a6   : > { %v986_v27 = vpop.eup %985  ;;  %v736_v28 = vadd.f32 %v720_v26, %v1374_v54  ;;  %v615_v30 = vadd.f32 %v614_v29, %v550_v23  ;;  %v558_v48 = vpop.f32.mrf.mxu2 }
 0x1a7   : > { %v657_v50 = vmul.f32 0.1, %v986_v27  ;;  %v559_v56 = vadd.f32 %v1408_v40, %v558_v48 }
 0x1a8   : > { %752 = vst [vmem:[%s1416_s7 + $0x40] sm:$0xff] %v736_v28  ;;  %987 = vtanh.f32 %v615_v30 }
 0x1a9   : > { %v673_v31 = vadd.f32 %v657_v50, %v1378_v58 }
 0x1ab   : > { %vm689_vm9 = vcmp.ge.f32.partialorder %v673_v31, 0.0  ;;  %v705_v36 = vmul.f32 0.01, %v673_v31 }
 0x1ad   : > { %v721_v37 = vsel %vm689_vm9, %v673_v31, %v705_v36  ;;  %v617_v32 = vpop.f32.mrf.mxu3 }
 0x1ae   : > { %v988_v39 = vpop.eup %987  ;;  %v737_v41 = vadd.f32 %v721_v37, %v1378_v58  ;;  %v618_v43 = vadd.f32 %v617_v32, %v553_v34  ;;  %v561_v61 = vpop.f32.mrf.mxu2 }
 0x1af   : > { %v658_v54 = vmul.f32 0.1, %v988_v39  ;;  %v562_v3 = vadd.f32 %v1408_v40, %v561_v61 }
 0x1b0   : > { %753 = vst [vmem:[%s1416_s7 + $0x48] sm:$0xff] %v737_v41  ;;  %989 = vtanh.f32 %v618_v43 }
 0x1b1   : > { %v674_v44 = vadd.f32 %v658_v54, %v1382_v62 }
 0x1b3   : > { %vm690_vm10 = vcmp.ge.f32.partialorder %v674_v44, 0.0  ;;  %v706_v47 = vmul.f32 0.01, %v674_v44 }
 0x1b5   : > { %v722_v49 = vsel %vm690_vm10, %v674_v44, %v706_v47  ;;  %v620_v51 = vpop.f32.mrf.mxu3 }
 0x1b6   : > { %v990_v35 = vpop.eup %989  ;;  %v738_v52 = vadd.f32 %v722_v49, %v1382_v62  ;;  %v621_v53 = vadd.f32 %v620_v51, %v556_v45 }
 0x1b7   : > { %v659_v58 = vmul.f32 0.1, %v990_v35 }
 0x1b8   : > { %754 = vst [vmem:[%s1416_s7 + $0x50] sm:$0xff] %v738_v52  ;;  %991 = vtanh.f32 %v621_v53 }
 0x1b9   : > { %v675_v55 = vadd.f32 %v659_v58, %v1386_v2 }
 0x1bb   : > { %vm691_vm11 = vcmp.ge.f32.partialorder %v675_v55, 0.0  ;;  %v707_v57 = vmul.f32 0.01, %v675_v55 }
 0x1bd   : > { %v723_v59 = vsel %vm691_vm11, %v675_v55, %v707_v57  ;;  %v623_v60 = vpop.f32.mrf.mxu3 }
 0x1be   : > { %v992_v63 = vpop.eup %991  ;;  %v739_v38 = vadd.f32 %v723_v59, %v1386_v2  ;;  %v624_v0 = vadd.f32 %v623_v60, %v559_v56  ;;  %v564_v2 = vpop.f32.mrf.mxu2 }
 0x1bf   : > { %v660_v62 = vmul.f32 0.1, %v992_v63  ;;  %v565_v25 = vadd.f32 %v1408_v40, %v564_v2 }
 0x1c0   : > { %755 = vst [vmem:[%s1416_s7 + $0x58] sm:$0xff] %v739_v38  ;;  %993 = vtanh.f32 %v624_v0 }
 0x1c1   : > { %v676_v1 = vadd.f32 %v660_v62, %v1390_v6 }
 0x1c3   : > { %vm692_vm12 = vcmp.ge.f32.partialorder %v676_v1, 0.0  ;;  %v708_v4 = vmul.f32 0.01, %v676_v1 }
 0x1c5   : > { %v724_v5 = vsel %vm692_vm12, %v676_v1, %v708_v4  ;;  %v626_v7 = vpop.f32.mrf.mxu3 }
 0x1c6   : > { %v994_v8 = vpop.eup %993  ;;  %v740_v9 = vadd.f32 %v724_v5, %v1390_v6  ;;  %v627_v11 = vadd.f32 %v626_v7, %v562_v3 }
 0x1c7   : > { %v661_v42 = vmul.f32 0.1, %v994_v8 }
 0x1c8   : > { %756 = vst [vmem:[%s1416_s7 + $0x60] sm:$0xff] %v740_v9  ;;  %995 = vtanh.f32 %v627_v11 }
 0x1c9   : > { %v677_v12 = vadd.f32 %v661_v42, %v1394_v10 }
 0x1cb   : > { %vm693_vm13 = vcmp.ge.f32.partialorder %v677_v12, 0.0  ;;  %v709_v13 = vmul.f32 0.01, %v677_v12 }
 0x1cd   : > { %v725_v15 = vsel %vm693_vm13, %v677_v12, %v709_v13  ;;  %v629_v16 = vpop.f32.mrf.mxu3 }
 0x1ce   : > { %v996_v17 = vpop.eup %995  ;;  %v741_v19 = vadd.f32 %v725_v15, %v1394_v10  ;;  %v630_v6 = vadd.f32 %v629_v16, %v565_v25 }
 0x1cf   : > { %v662_v20 = vmul.f32 0.1, %v996_v17 }
 0x1d0   : > { %757 = vst [vmem:[%s1416_s7 + $0x68] sm:$0xff] %v741_v19  ;;  %997 = vtanh.f32 %v630_v6 }
 0x1d1   : > { %v678_v21 = vadd.f32 %v662_v20, %v1398_v14 }
 0x1d3   : > { %vm694_vm14 = vcmp.ge.f32.partialorder %v678_v21, 0.0  ;;  %v710_v46 = vmul.f32 0.01, %v678_v21 }
 0x1d5   : > { %v726_v40 = vsel %vm694_vm14, %v678_v21, %v710_v46 }
 0x1d6   : > { %v998_v22 = vpop.eup %997  ;;  %v742_v10 = vadd.f32 %v726_v40, %v1398_v14 }
 0x1d7   : > { %v663_v23 = vmul.f32 0.1, %v998_v22 }
 0x1d8   : > { %758 = vst [vmem:[%s1416_s7 + $0x70] sm:$0xff] %v742_v10 }
 0x1d9   : > { %v679_v24 = vadd.f32 %v663_v23, %v1402_v18 }
 0x1db   : > { %vm695_vm15 = vcmp.ge.f32.partialorder %v679_v24, 0.0  ;;  %v711_v26 = vmul.f32 0.01, %v679_v24 }
 0x1dd   : > { %v727_v29 = vsel %vm695_vm15, %v679_v24, %v711_v26 }
 0x1de   : > { %v743_v27 = vadd.f32 %v727_v29, %v1402_v18 }
 0x1e0   : > { %759 = vst [vmem:[%s1416_s7 + $0x78] sm:$0xff] %v743_v27 }
 0x1e1   : > { %1116 = shalt.err (!%p1113_p10)
}
 0x1e2   : > { %s1167_s28 = smov 128   ;;  %s1168_s30 = smov 8  }
 0x1e3   : > { %903 = dma.vmem_to_hbm [thread:$0]  (%p1260_p3), %s774_s25, 2048, %s776_s24, %s761_s19, %s1167_s28, %s1167_s28, %s1168_s30  }
 0x1e4 PF: > { %s790_s5 = sand.u32 1, %s1147_s15   ;;  %p1522_p12 = scmp.ge.s32.totalorder %s1159_s18, 2 }
 0x1e5   : > { %s791_s6 = scalar_lea.sflag [#allocation4], %s790_s5 }
 0x1e6   : > { %p917_p13 = pnand %p1522_p12, %p1229_p6 }
 0x1e8   : > { %p918_p0 = pneg %p917_p13 }
 0x1ea   : > { %1142 = dma.done.wait (%p918_p0), %s791_s6, 2048  }
 0x1eb   : > { %1144 = vsyncadd (%p918_p0), %s791_s6, 4294965248  ;;  %p18_p5 = scmp.ge.s32.totalorder %s1250_s10, 4   ;;  %s1523_s15 = smov %s1151_s16 }
 0x1ec   : > { %s1524_s16 = smov %s1155_s17  ;;  %s1525_s17 = smov %s1266_s14 }
 0x1ed   : > { %s1526_s18 = smov %s1250_s10  ;;  %20 = sbr.rel (!%p18_p5) target bundleno = 6 (0x6), region = 90 }
 0x1f2   :  { %797 = vsyncpa [#allocation3], 1 }
 0x1f3   :  { %799 = vsyncpa [#allocation3 + $0x1], 1 }
 0x1f4   :  { %800 = vsyncpa [#allocation6], 1 }
 0x1f5   :  { %801 = vsyncpa [#allocation4], 1 }
 0x1f6   :  { %803 = vsyncpa [#allocation4 + $0x1], 1 }

</bundles_post_ra>
